<compile_context>
chip_gen: v5e
topology: v5e:2x2
jax: 0.10.0
libtpu: 0.0.40
codegen_flags: <defaults>
</compile_context>

<pallas_src>
import functools
import math

import jax
import jax.numpy as jnp
from jax.experimental import pallas as pl
from jax.experimental.pallas import tpu as pltpu

# Large finite negative used for masking (instead of -inf) so the streaming
# softmax never hits (-inf) - (-inf) = NaN.  Rows that are masked over the
# entire key axis therefore produce a finite softmax instead of torch's NaN.
_MASK_VALUE = -0.7 * float(jnp.finfo(jnp.float32).max)


def _vmem_limit_bytes():
  """Generation-aware VMEM budget: ~75% of physical capacity with headroom."""
  try:
    cap = int(pltpu.get_tpu_info().vmem_capacity_bytes)
  except Exception:  # non-TPU tracing / API drift -> conservative default
    cap = 64 * 1024 * 1024
  return int(min(cap * 3 // 4, 100 * 1024 * 1024))


# --------------------------------------------------------------------------
# Stage 1: fused Q/K/V projections, written head-major (B, H, S, d_k).
# --------------------------------------------------------------------------
def _qkv_proj_kernel(qx_ref, kx_ref, vx_ref,
                     wq_ref, bq_ref, wk_ref, bk_ref, wv_ref, bv_ref,
                     q_out, k_out, v_out, *, H, d_k):
  f32 = jnp.float32

  def project(x_ref, w_ref, b_ref, o_ref):
    # Lane-dense (ts, D) @ (D, D) matmul (full MXU output width and
    # contraction depth), then split the lane dim into heads exactly once.
    y = jnp.dot(x_ref[0], w_ref[...], preferred_element_type=f32) + b_ref[...]
    y = y.astype(o_ref.dtype)
    for h in range(H):                      # static unroll; one-time per token
      o_ref[0, h] = y[:, h * d_k:(h + 1) * d_k]

  project(qx_ref, wq_ref, bq_ref, q_out)
  project(kx_ref, wk_ref, bk_ref, k_out)
  project(vx_ref, wv_ref, bv_ref, v_out)


# --------------------------------------------------------------------------
# Stage 2: flash attention over pre-projected head-major Q/K/V + out-proj.
# --------------------------------------------------------------------------
def _make_flash_kernel(H, d_k, tq, tk, mask_mode, compute_dtype):
  f32 = jnp.float32
  cd = compute_dtype

  def kernel(*args):
    if mask_mode == "dense":
      (q_ref, k_ref, v_ref, m_ref, wo_ref, bo_ref, out_ref,
       m_scr, l_scr, acc_scr) = args
    else:
      (q_ref, k_ref, v_ref, wo_ref, bo_ref, out_ref,
       m_scr, l_scr, acc_scr) = args
      m_ref = None

    qi = pl.program_id(1)
    ki = pl.program_id(2)
    nk = pl.num_programs(2)

    if mask_mode == "causal":
      # Last kv tile that intersects the causal triangle for this q tile.
      last_ki = jnp.minimum(nk - 1, ((qi + 1) * tq - 1) // tk)
    else:
      last_ki = nk - 1

    @pl.when(ki == 0)
    def _init():
      m_scr[...] = jnp.full(m_scr.shape, _MASK_VALUE, m_scr.dtype)
      l_scr[...] = jnp.zeros(l_scr.shape, l_scr.dtype)
      acc_scr[...] = jnp.zeros(acc_scr.shape, acc_scr.dtype)

    @pl.when(ki <= last_ki)         # skip kv tiles that are fully masked out
    def _compute():
      q = q_ref[0]                                           # (H, tq, d_k)
      k = k_ref[0]                                           # (H, tk, d_k)
      v = v_ref[0]
      # Head-batched scores; contraction on the last dims (no K transpose).
      s = jnp.einsum("hqd,hkd->hqk", q, k,
                     preferred_element_type=f32)             # (H, tq, tk)

      if mask_mode == "dense":
        bias = jnp.where(m_ref[0] == 0, _MASK_VALUE, 0.0).astype(f32)
        s = s + bias[None]
      elif mask_mode == "causal":
        q_pos = qi * tq + jax.lax.broadcasted_iota(jnp.int32, (tq, tk), 0)
        k_pos = ki * tk + jax.lax.broadcasted_iota(jnp.int32, (tq, tk), 1)
        bias = jnp.where(q_pos >= k_pos, 0.0, _MASK_VALUE).astype(f32)
        s = s + bias[None]

      # Online softmax update (f32 state).
      m_prev = m_scr[...]                                    # (H, tq, 1)
      m_new = jnp.maximum(m_prev, jnp.max(s, axis=-1, keepdims=True))
      alpha = jnp.exp(m_prev - m_new)
      p = jnp.exp(s - m_new)                                 # (H, tq, tk)
      l_scr[...] = alpha * l_scr[...] + jnp.sum(p, axis=-1, keepdims=True)
      acc_scr[...] = alpha * acc_scr[...] + jnp.einsum(
          "hqk,hkd->hqd", p.astype(cd), v, preferred_element_type=f32)
      m_scr[...] = m_new

    @pl.when(ki == last_ki)
    def _finalize():
      # Approx EUP reciprocal + one Newton step -> near-exact 1/l for free.
      l = l_scr[...]
      inv = pl.reciprocal(l, approx=True)
      inv = inv * (2.0 - l * inv)
      o = (acc_scr[...] * inv).astype(cd)                    # (H, tq, d_k)
      # Fold heads straight through W_o (batched matmul + head-sum): the
      # output tile stays lane-dense (tq, D).
      res = jnp.einsum("hqd,hdD->hqD", o, wo_ref[...],
                       preferred_element_type=f32)
      res = jnp.sum(res, axis=0) + bo_ref[...]               # (tq, D)
      out_ref[0] = res.astype(out_ref.dtype)

  return kernel


def multiheaded_attention(Q, K, V, mask, params, H, *, causal=False,
                          compute_dtype=jnp.bfloat16,
                          q_tile=256, kv_tile=256, proj_tile=256):
  """Q, K, V: (B, S, D). mask: (B, S, S) {0,1} or None. params: x@W+b weights.

  Set causal=True (and mask=None) to generate the subsequent mask in-kernel
  with fully-masked kv-tile skipping instead of streaming a dense mask.
  """
  B, S, D = Q.shape
  assert D % H == 0
  d_k = D // H
  cd = compute_dtype
  f32 = jnp.float32

  tq = min(q_tile, S)
  tk = min(kv_tile, S)
  ts = min(proj_tile, S)
  assert S % tq == 0 and S % tk == 0 and S % ts == 0, "seq len must tile evenly"
  nq, nk, ns = S // tq, S // tk, S // ts

  if causal:
    mask_mode = "causal"
  elif mask is not None:
    mask_mode = "dense"
  else:
    mask_mode = "none"

  vmem_limit = _vmem_limit_bytes()
  itemsize = jnp.dtype(cd).itemsize
  scale = 1.0 / math.sqrt(d_k)   # folded into Wq/bq: zero in-kernel cost

  # ---------------- stage 1: Q/K/V projections (hoisted out of the flash loop)
  wq = (params["wq"] * scale).astype(cd)
  bq = (params["bq"] * scale).astype(f32)
  wk = params["wk"].astype(cd)
  bk = params["bk"].astype(f32)
  wv = params["wv"].astype(cd)
  bv = params["bv"].astype(f32)

  x_spec = pl.BlockSpec((1, ts, D), lambda b, si: (b, si, 0))
  # NOTE: weights use constant-index BlockSpecs (resident in VMEM). They are
  # double-buffered by the default pipeline; acceptable here since only W_o
  # remains in the attention kernel and the QKV weights live in this small
  # projection kernel.
  w_spec = pl.BlockSpec((D, D), lambda b, si: (0, 0))
  b_spec = pl.BlockSpec((1, D), lambda b, si: (0, 0))
  hm_spec = pl.BlockSpec((1, H, ts, d_k), lambda b, si: (b, 0, si, 0))
  hm_shape = jax.ShapeDtypeStruct((B, H, S, d_k), cd)

  proj_cost = pl.CostEstimate(
      flops=6 * B * S * D * D,
      transcendentals=0,
      bytes_accessed=6 * B * S * D * itemsize + 3 * D * D * itemsize + 3 * D * 4,
  )

  q_hm, k_hm, v_hm = pl.pallas_call(
      functools.partial(_qkv_proj_kernel, H=H, d_k=d_k),
      out_shape=(hm_shape, hm_shape, hm_shape),
      grid_spec=pltpu.PrefetchScalarGridSpec(
          num_scalar_prefetch=0,
          grid=(B, ns),
          in_specs=[x_spec, x_spec, x_spec,
                    w_spec, b_spec, w_spec, b_spec, w_spec, b_spec],
          out_specs=(hm_spec, hm_spec, hm_spec),
      ),
      compiler_params=pltpu.CompilerParams(
          dimension_semantics=("parallel", "parallel"),
          vmem_limit_bytes=vmem_limit,
      ),
      cost_estimate=proj_cost,
  )(Q.astype(cd), K.astype(cd), V.astype(cd), wq, bq, wk, bk, wv, bv)

  # ---------------- stage 2: flash attention + fused output projection
  wo = params["wo"].reshape(H, d_k, D).astype(cd)   # rows are head-major
  bo = params["bo"].astype(f32)

  q_spec = pl.BlockSpec((1, H, tq, d_k), lambda b, qi, ki: (b, 0, qi, 0))
  if mask_mode == "causal":
    def kv_index(b, qi, ki):
      # Clamp fully-masked steps to the last contributing kv tile so no
      # useless K/V DMA is issued for skipped tiles.
      return (b, 0, jnp.minimum(ki, ((qi + 1) * tq - 1) // tk), 0)
  else:
    def kv_index(b, qi, ki):
      return (b, 0, ki, 0)
  kv_spec = pl.BlockSpec((1, H, tk, d_k), kv_index)
  wo_spec = pl.BlockSpec((H, d_k, D), lambda b, qi, ki: (0, 0, 0))
  bo_spec = pl.BlockSpec((1, D), lambda b, qi, ki: (0, 0))
  out_spec = pl.BlockSpec((1, tq, D), lambda b, qi, ki: (b, qi, 0))

  in_specs = [q_spec, kv_spec, kv_spec]
  args = [q_hm, k_hm, v_hm]
  if mask_mode == "dense":
    in_specs.append(pl.BlockSpec((1, tq, tk), lambda b, qi, ki: (b, qi, ki)))
    args.append(mask.astype(jnp.int8))               # 4x fewer mask DMA bytes
  in_specs += [wo_spec, bo_spec]
  args += [wo, bo]

  sfrac = 0.5 if mask_mode == "causal" else 1.0      # advisory only
  attn_cost = pl.CostEstimate(
      flops=int(B * (4 * S * S * D * sfrac + 2 * S * D * D)),
      transcendentals=int(B * H * S * S * sfrac),
      bytes_accessed=int(
          B * S * D * itemsize                       # Q (head-major)
          + 2 * nq * B * S * D * itemsize * sfrac    # K/V re-streamed per q tile
          + B * S * D * 4                            # f32 output
          + (B * S * S * sfrac if mask_mode == "dense" else 0)
          + D * D * itemsize + D * 4),
  )

  kernel = _make_flash_kernel(H, d_k, tq, tk, mask_mode, cd)

  return pl.pallas_call(
      kernel,
      out_shape=jax.ShapeDtypeStruct((B, S, D), f32),
      grid_spec=pltpu.PrefetchScalarGridSpec(
          num_scalar_prefetch=0,
          grid=(B, nq, nk),                          # reduction (kv) axis last
          in_specs=in_specs,
          out_specs=out_spec,
          scratch_shapes=[
              pltpu.VMEM((H, tq, 1), f32),           # running max
              pltpu.VMEM((H, tq, 1), f32),           # running denominator
              pltpu.VMEM((H, tq, d_k), f32),         # running numerator
          ],
      ),
      compiler_params=pltpu.CompilerParams(
          dimension_semantics=("parallel", "parallel", "arbitrary"),
          vmem_limit_bytes=vmem_limit,
      ),
      cost_estimate=attn_cost,
  )(*args)


# --------------------------------------------------------------------------
# Pure-JAX reference reproducing the PyTorch forward semantics.
# --------------------------------------------------------------------------
def _reference(Q, K, V, mask, params, H):
  B, S, D = Q.shape
  d_k = D // H
  q = Q @ params["wq"] + params["bq"]
  k = K @ params["wk"] + params["bk"]
  v = V @ params["wv"] + params["bv"]
  q = q.reshape(B, S, H, d_k).transpose(0, 2, 1, 3)
  k = k.reshape(B, S, H, d_k).transpose(0, 2, 1, 3)
  v = v.reshape(B, S, H, d_k).transpose(0, 2, 1, 3)
  scores = jnp.einsum("bhqd,bhkd->bhqk", q, k) / math.sqrt(d_k)
  if mask is not None:
    scores = jnp.where(mask[:, None, :, :] == 0, -jnp.inf, scores)
  p = jax.nn.softmax(scores, axis=-1)
  att = jnp.einsum("bhqk,bhkd->bhqd", p, v)
  att = att.transpose(0, 2, 1, 3).reshape(B, S, D)
  return att @ params["wo"] + params["bo"]


def _subsequent_mask(size):
  return jnp.tril(jnp.ones((size, size), dtype=jnp.int32))


if __name__ == "__main__":
  B, S, D, H = 2, 8, 32, 4

  key = jax.random.PRNGKey(0)
  keys = jax.random.split(key, 11)

  Q = jax.random.normal(keys[0], (B, S, D), dtype=jnp.float32)
  K = jax.random.normal(keys[1], (B, S, D), dtype=jnp.float32)
  V = jax.random.normal(keys[2], (B, S, D), dtype=jnp.float32)

  causal_mask = jnp.broadcast_to(_subsequent_mask(S)[None, :, :], (B, S, S))

  # Deterministic nn.Linear-like init, stored as (D_in, D_out).
  bound = 1.0 / math.sqrt(D)
  params = {
      "wq": jax.random.uniform(keys[3], (D, D), minval=-bound, maxval=bound),
      "bq": jax.random.uniform(keys[4], (1, D), minval=-bound, maxval=bound),
      "wk": jax.random.uniform(keys[5], (D, D), minval=-bound, maxval=bound),
      "bk": jax.random.uniform(keys[6], (1, D), minval=-bound, maxval=bound),
      "wv": jax.random.uniform(keys[7], (D, D), minval=-bound, maxval=bound),
      "bv": jax.random.uniform(keys[8], (1, D), minval=-bound, maxval=bound),
      "wo": jax.random.uniform(keys[9], (D, D), minval=-bound, maxval=bound),
      "bo": jax.random.uniform(keys[10], (1, D), minval=-bound, maxval=bound),
  }

  ref = _reference(Q, K, V, causal_mask, params, H)

  # 1) Default path: bf16 MXU operands, causal mask generated in-kernel with
  #    fully-masked kv-tile skipping (no dense mask DMA).
  out_causal = multiheaded_attention(Q, K, V, None, params, H, causal=True)
  out_causal = jax.block_until_ready(out_causal)
  assert out_causal.shape == (B, S, D)
  assert bool(jnp.all(jnp.isfinite(out_causal)))
  assert jnp.allclose(out_causal, ref, atol=5e-2, rtol=5e-2), \
      "bf16 causal kernel mismatch vs reference"

  # 2) Arbitrary dense-mask path (same causal mask supplied as an int mask),
  #    f32 MXU operands.
  out_dense = multiheaded_attention(Q, K, V, causal_mask, params, H,
                                    compute_dtype=jnp.float32)
  out_dense = jax.block_until_ready(out_dense)
  assert bool(jnp.all(jnp.isfinite(out_dense)))
  assert jnp.allclose(out_dense, ref, atol=1e-2, rtol=1e-2), \
      "f32 dense-mask kernel mismatch vs reference"

  print("KERNEL_OK")
</pallas_src>

<mosaic_0001>
module attributes {stable_mosaic.version = 11 : i64} {
  func.func @_qkv_proj_kernel(%arg0: i32, %arg1: i32, %arg2: memref<1x8x32xbf16, #tpu.memory_space<vmem>>, %arg3: memref<1x8x32xbf16, #tpu.memory_space<vmem>>, %arg4: memref<1x8x32xbf16, #tpu.memory_space<vmem>>, %arg5: memref<32x32xbf16, #tpu.memory_space<vmem>>, %arg6: memref<1x32xf32, #tpu.memory_space<vmem>>, %arg7: memref<32x32xbf16, #tpu.memory_space<vmem>>, %arg8: memref<1x32xf32, #tpu.memory_space<vmem>>, %arg9: memref<32x32xbf16, #tpu.memory_space<vmem>>, %arg10: memref<1x32xf32, #tpu.memory_space<vmem>>, %arg11: memref<1x4x8x8xbf16, #tpu.memory_space<vmem>>, %arg12: memref<1x4x8x8xbf16, #tpu.memory_space<vmem>>, %arg13: memref<1x4x8x8xbf16, #tpu.memory_space<vmem>>) attributes {dimension_semantics = [#tpu.dimension_semantics<parallel>, #tpu.dimension_semantics<parallel>], iteration_bounds = array<i64: 2, 1>, scalar_prefetch = 0 : i64, scratch_operands = 0 : i64, tpu.core_type = #tpu.core_type<tc>, window_params = [{transform_indices = @transform_0, window_bounds = array<i64: 1, 8, 32>}, {transform_indices = @transform_1, window_bounds = array<i64: 1, 8, 32>}, {transform_indices = @transform_2, window_bounds = array<i64: 1, 8, 32>}, {pipeline_mode = #tpu.pipeline_mode<synchronous>, transform_indices = @transform_3, window_bounds = array<i64: 32, 32>}, {pipeline_mode = #tpu.pipeline_mode<synchronous>, transform_indices = @transform_4, window_bounds = array<i64: 1, 32>}, {pipeline_mode = #tpu.pipeline_mode<synchronous>, transform_indices = @transform_5, window_bounds = array<i64: 32, 32>}, {pipeline_mode = #tpu.pipeline_mode<synchronous>, transform_indices = @transform_6, window_bounds = array<i64: 1, 32>}, {pipeline_mode = #tpu.pipeline_mode<synchronous>, transform_indices = @transform_7, window_bounds = array<i64: 32, 32>}, {pipeline_mode = #tpu.pipeline_mode<synchronous>, transform_indices = @transform_8, window_bounds = array<i64: 1, 32>}, {transform_indices = @transform_9, window_bounds = array<i64: 1, 4, 8, 8>}, {transform_indices = @transform_10, window_bounds = array<i64: 1, 4, 8, 8>}, {transform_indices = @transform_11, window_bounds = array<i64: 1, 4, 8, 8>}]} {
    %c0 = arith.constant 0 : index
    %c0_0 = arith.constant 0 : index
    %c0_1 = arith.constant 0 : index
    %0 = vector.load %arg2[%c0, %c0_0, %c0_1] : memref<1x8x32xbf16, #tpu.memory_space<vmem>>, vector<1x8x32xbf16>
    %1 = vector.shape_cast %0 : vector<1x8x32xbf16> to vector<8x32xbf16>
    %c0_2 = arith.constant 0 : index
    %c0_3 = arith.constant 0 : index
    %2 = vector.load %arg5[%c0_2, %c0_3] : memref<32x32xbf16, #tpu.memory_space<vmem>>, vector<32x32xbf16>
    %cst = arith.constant dense<0.000000e+00> : vector<8x32xf32>
    %3 = tpu.matmul %1, %2, %cst {dimension_numbers = #tpu.dot_dimension_numbers<[1], [0], [0], [1], [0, 0, 1, 1], [], []>} : vector<8x32xbf16>, vector<32x32xbf16>, vector<8x32xf32> -> vector<8x32xf32>
    %c0_4 = arith.constant 0 : index
    %c0_5 = arith.constant 0 : index
    %4 = vector.load %arg6[%c0_4, %c0_5] : memref<1x32xf32, #tpu.memory_space<vmem>>, vector<1x32xf32>
    %5 = vector.broadcast %4 : vector<1x32xf32> to vector<8x32xf32>
    %6 = arith.addf %3, %5 : vector<8x32xf32>
    %7 = arith.truncf %6 : vector<8x32xf32> to vector<8x32xbf16>
    %8 = vector.extract_strided_slice %7 {offsets = [0, 0], sizes = [8, 8], strides = [1, 1]} : vector<8x32xbf16> to vector<8x8xbf16>
    %c0_6 = arith.constant 0 : index
    %c0_7 = arith.constant 0 : index
    %c0_8 = arith.constant 0 : index
    %c0_9 = arith.constant 0 : index
    %9 = vector.load %arg11[%c0_6, %c0_7, %c0_8, %c0_9] : memref<1x4x8x8xbf16, #tpu.memory_space<vmem>>, vector<1x1x8x8xbf16>
    %10 = vector.shape_cast %9 : vector<1x1x8x8xbf16> to vector<8x8xbf16>
    %11 = vector.shape_cast %8 : vector<8x8xbf16> to vector<1x1x8x8xbf16>
    tpu.vector_store %arg11[%c0_6, %c0_7, %c0_8, %c0_9], %11 {strides = array<i32>} : memref<1x4x8x8xbf16, #tpu.memory_space<vmem>>, vector<1x1x8x8xbf16>,
    %12 = vector.extract_strided_slice %7 {offsets = [0, 8], sizes = [8, 8], strides = [1, 1]} : vector<8x32xbf16> to vector<8x8xbf16>
    %c0_10 = arith.constant 0 : index
    %c1 = arith.constant 1 : index
    %c0_11 = arith.constant 0 : index
    %c0_12 = arith.constant 0 : index
    %13 = vector.load %arg11[%c0_10, %c1, %c0_11, %c0_12] : memref<1x4x8x8xbf16, #tpu.memory_space<vmem>>, vector<1x1x8x8xbf16>
    %14 = vector.shape_cast %13 : vector<1x1x8x8xbf16> to vector<8x8xbf16>
    %15 = vector.shape_cast %12 : vector<8x8xbf16> to vector<1x1x8x8xbf16>
    tpu.vector_store %arg11[%c0_10, %c1, %c0_11, %c0_12], %15 {strides = array<i32>} : memref<1x4x8x8xbf16, #tpu.memory_space<vmem>>, vector<1x1x8x8xbf16>,
    %16 = vector.extract_strided_slice %7 {offsets = [0, 16], sizes = [8, 8], strides = [1, 1]} : vector<8x32xbf16> to vector<8x8xbf16>
    %c0_13 = arith.constant 0 : index
    %c2 = arith.constant 2 : index
    %c0_14 = arith.constant 0 : index
    %c0_15 = arith.constant 0 : index
    %17 = vector.load %arg11[%c0_13, %c2, %c0_14, %c0_15] : memref<1x4x8x8xbf16, #tpu.memory_space<vmem>>, vector<1x1x8x8xbf16>
    %18 = vector.shape_cast %17 : vector<1x1x8x8xbf16> to vector<8x8xbf16>
    %19 = vector.shape_cast %16 : vector<8x8xbf16> to vector<1x1x8x8xbf16>
    tpu.vector_store %arg11[%c0_13, %c2, %c0_14, %c0_15], %19 {strides = array<i32>} : memref<1x4x8x8xbf16, #tpu.memory_space<vmem>>, vector<1x1x8x8xbf16>,
    %20 = vector.extract_strided_slice %7 {offsets = [0, 24], sizes = [8, 8], strides = [1, 1]} : vector<8x32xbf16> to vector<8x8xbf16>
    %c0_16 = arith.constant 0 : index
    %c3 = arith.constant 3 : index
    %c0_17 = arith.constant 0 : index
    %c0_18 = arith.constant 0 : index
    %21 = vector.load %arg11[%c0_16, %c3, %c0_17, %c0_18] : memref<1x4x8x8xbf16, #tpu.memory_space<vmem>>, vector<1x1x8x8xbf16>
    %22 = vector.shape_cast %21 : vector<1x1x8x8xbf16> to vector<8x8xbf16>
    %23 = vector.shape_cast %20 : vector<8x8xbf16> to vector<1x1x8x8xbf16>
    tpu.vector_store %arg11[%c0_16, %c3, %c0_17, %c0_18], %23 {strides = array<i32>} : memref<1x4x8x8xbf16, #tpu.memory_space<vmem>>, vector<1x1x8x8xbf16>,
    %c0_19 = arith.constant 0 : index
    %c0_20 = arith.constant 0 : index
    %c0_21 = arith.constant 0 : index
    %24 = vector.load %arg3[%c0_19, %c0_20, %c0_21] : memref<1x8x32xbf16, #tpu.memory_space<vmem>>, vector<1x8x32xbf16>
    %25 = vector.shape_cast %24 : vector<1x8x32xbf16> to vector<8x32xbf16>
    %c0_22 = arith.constant 0 : index
    %c0_23 = arith.constant 0 : index
    %26 = vector.load %arg7[%c0_22, %c0_23] : memref<32x32xbf16, #tpu.memory_space<vmem>>, vector<32x32xbf16>
    %cst_24 = arith.constant dense<0.000000e+00> : vector<8x32xf32>
    %27 = tpu.matmul %25, %26, %cst_24 {dimension_numbers = #tpu.dot_dimension_numbers<[1], [0], [0], [1], [0, 0, 1, 1], [], []>} : vector<8x32xbf16>, vector<32x32xbf16>, vector<8x32xf32> -> vector<8x32xf32>
    %c0_25 = arith.constant 0 : index
    %c0_26 = arith.constant 0 : index
    %28 = vector.load %arg8[%c0_25, %c0_26] : memref<1x32xf32, #tpu.memory_space<vmem>>, vector<1x32xf32>
    %29 = vector.broadcast %28 : vector<1x32xf32> to vector<8x32xf32>
    %30 = arith.addf %27, %29 : vector<8x32xf32>
    %31 = arith.truncf %30 : vector<8x32xf32> to vector<8x32xbf16>
    %32 = vector.extract_strided_slice %31 {offsets = [0, 0], sizes = [8, 8], strides = [1, 1]} : vector<8x32xbf16> to vector<8x8xbf16>
    %c0_27 = arith.constant 0 : index
    %c0_28 = arith.constant 0 : index
    %c0_29 = arith.constant 0 : index
    %c0_30 = arith.constant 0 : index
    %33 = vector.load %arg12[%c0_27, %c0_28, %c0_29, %c0_30] : memref<1x4x8x8xbf16, #tpu.memory_space<vmem>>, vector<1x1x8x8xbf16>
    %34 = vector.shape_cast %33 : vector<1x1x8x8xbf16> to vector<8x8xbf16>
    %35 = vector.shape_cast %32 : vector<8x8xbf16> to vector<1x1x8x8xbf16>
    tpu.vector_store %arg12[%c0_27, %c0_28, %c0_29, %c0_30], %35 {strides = array<i32>} : memref<1x4x8x8xbf16, #tpu.memory_space<vmem>>, vector<1x1x8x8xbf16>,
    %36 = vector.extract_strided_slice %31 {offsets = [0, 8], sizes = [8, 8], strides = [1, 1]} : vector<8x32xbf16> to vector<8x8xbf16>
    %c0_31 = arith.constant 0 : index
    %c1_32 = arith.constant 1 : index
    %c0_33 = arith.constant 0 : index
    %c0_34 = arith.constant 0 : index
    %37 = vector.load %arg12[%c0_31, %c1_32, %c0_33, %c0_34] : memref<1x4x8x8xbf16, #tpu.memory_space<vmem>>, vector<1x1x8x8xbf16>
    %38 = vector.shape_cast %37 : vector<1x1x8x8xbf16> to vector<8x8xbf16>
    %39 = vector.shape_cast %36 : vector<8x8xbf16> to vector<1x1x8x8xbf16>
    tpu.vector_store %arg12[%c0_31, %c1_32, %c0_33, %c0_34], %39 {strides = array<i32>} : memref<1x4x8x8xbf16, #tpu.memory_space<vmem>>, vector<1x1x8x8xbf16>,
    %40 = vector.extract_strided_slice %31 {offsets = [0, 16], sizes = [8, 8], strides = [1, 1]} : vector<8x32xbf16> to vector<8x8xbf16>
    %c0_35 = arith.constant 0 : index
    %c2_36 = arith.constant 2 : index
    %c0_37 = arith.constant 0 : index
    %c0_38 = arith.constant 0 : index
    %41 = vector.load %arg12[%c0_35, %c2_36, %c0_37, %c0_38] : memref<1x4x8x8xbf16, #tpu.memory_space<vmem>>, vector<1x1x8x8xbf16>
    %42 = vector.shape_cast %41 : vector<1x1x8x8xbf16> to vector<8x8xbf16>
    %43 = vector.shape_cast %40 : vector<8x8xbf16> to vector<1x1x8x8xbf16>
    tpu.vector_store %arg12[%c0_35, %c2_36, %c0_37, %c0_38], %43 {strides = array<i32>} : memref<1x4x8x8xbf16, #tpu.memory_space<vmem>>, vector<1x1x8x8xbf16>,
    %44 = vector.extract_strided_slice %31 {offsets = [0, 24], sizes = [8, 8], strides = [1, 1]} : vector<8x32xbf16> to vector<8x8xbf16>
    %c0_39 = arith.constant 0 : index
    %c3_40 = arith.constant 3 : index
    %c0_41 = arith.constant 0 : index
    %c0_42 = arith.constant 0 : index
    %45 = vector.load %arg12[%c0_39, %c3_40, %c0_41, %c0_42] : memref<1x4x8x8xbf16, #tpu.memory_space<vmem>>, vector<1x1x8x8xbf16>
    %46 = vector.shape_cast %45 : vector<1x1x8x8xbf16> to vector<8x8xbf16>
    %47 = vector.shape_cast %44 : vector<8x8xbf16> to vector<1x1x8x8xbf16>
    tpu.vector_store %arg12[%c0_39, %c3_40, %c0_41, %c0_42], %47 {strides = array<i32>} : memref<1x4x8x8xbf16, #tpu.memory_space<vmem>>, vector<1x1x8x8xbf16>,
    %c0_43 = arith.constant 0 : index
    %c0_44 = arith.constant 0 : index
    %c0_45 = arith.constant 0 : index
    %48 = vector.load %arg4[%c0_43, %c0_44, %c0_45] : memref<1x8x32xbf16, #tpu.memory_space<vmem>>, vector<1x8x32xbf16>
    %49 = vector.shape_cast %48 : vector<1x8x32xbf16> to vector<8x32xbf16>
    %c0_46 = arith.constant 0 : index
    %c0_47 = arith.constant 0 : index
    %50 = vector.load %arg9[%c0_46, %c0_47] : memref<32x32xbf16, #tpu.memory_space<vmem>>, vector<32x32xbf16>
    %cst_48 = arith.constant dense<0.000000e+00> : vector<8x32xf32>
    %51 = tpu.matmul %49, %50, %cst_48 {dimension_numbers = #tpu.dot_dimension_numbers<[1], [0], [0], [1], [0, 0, 1, 1], [], []>} : vector<8x32xbf16>, vector<32x32xbf16>, vector<8x32xf32> -> vector<8x32xf32>
    %c0_49 = arith.constant 0 : index
    %c0_50 = arith.constant 0 : index
    %52 = vector.load %arg10[%c0_49, %c0_50] : memref<1x32xf32, #tpu.memory_space<vmem>>, vector<1x32xf32>
    %53 = vector.broadcast %52 : vector<1x32xf32> to vector<8x32xf32>
    %54 = arith.addf %51, %53 : vector<8x32xf32>
    %55 = arith.truncf %54 : vector<8x32xf32> to vector<8x32xbf16>
    %56 = vector.extract_strided_slice %55 {offsets = [0, 0], sizes = [8, 8], strides = [1, 1]} : vector<8x32xbf16> to vector<8x8xbf16>
    %c0_51 = arith.constant 0 : index
    %c0_52 = arith.constant 0 : index
    %c0_53 = arith.constant 0 : index
    %c0_54 = arith.constant 0 : index
    %57 = vector.load %arg13[%c0_51, %c0_52, %c0_53, %c0_54] : memref<1x4x8x8xbf16, #tpu.memory_space<vmem>>, vector<1x1x8x8xbf16>
    %58 = vector.shape_cast %57 : vector<1x1x8x8xbf16> to vector<8x8xbf16>
    %59 = vector.shape_cast %56 : vector<8x8xbf16> to vector<1x1x8x8xbf16>
    tpu.vector_store %arg13[%c0_51, %c0_52, %c0_53, %c0_54], %59 {strides = array<i32>} : memref<1x4x8x8xbf16, #tpu.memory_space<vmem>>, vector<1x1x8x8xbf16>,
    %60 = vector.extract_strided_slice %55 {offsets = [0, 8], sizes = [8, 8], strides = [1, 1]} : vector<8x32xbf16> to vector<8x8xbf16>
    %c0_55 = arith.constant 0 : index
    %c1_56 = arith.constant 1 : index
    %c0_57 = arith.constant 0 : index
    %c0_58 = arith.constant 0 : index
    %61 = vector.load %arg13[%c0_55, %c1_56, %c0_57, %c0_58] : memref<1x4x8x8xbf16, #tpu.memory_space<vmem>>, vector<1x1x8x8xbf16>
    %62 = vector.shape_cast %61 : vector<1x1x8x8xbf16> to vector<8x8xbf16>
    %63 = vector.shape_cast %60 : vector<8x8xbf16> to vector<1x1x8x8xbf16>
    tpu.vector_store %arg13[%c0_55, %c1_56, %c0_57, %c0_58], %63 {strides = array<i32>} : memref<1x4x8x8xbf16, #tpu.memory_space<vmem>>, vector<1x1x8x8xbf16>,
    %64 = vector.extract_strided_slice %55 {offsets = [0, 16], sizes = [8, 8], strides = [1, 1]} : vector<8x32xbf16> to vector<8x8xbf16>
    %c0_59 = arith.constant 0 : index
    %c2_60 = arith.constant 2 : index
    %c0_61 = arith.constant 0 : index
    %c0_62 = arith.constant 0 : index
    %65 = vector.load %arg13[%c0_59, %c2_60, %c0_61, %c0_62] : memref<1x4x8x8xbf16, #tpu.memory_space<vmem>>, vector<1x1x8x8xbf16>
    %66 = vector.shape_cast %65 : vector<1x1x8x8xbf16> to vector<8x8xbf16>
    %67 = vector.shape_cast %64 : vector<8x8xbf16> to vector<1x1x8x8xbf16>
    tpu.vector_store %arg13[%c0_59, %c2_60, %c0_61, %c0_62], %67 {strides = array<i32>} : memref<1x4x8x8xbf16, #tpu.memory_space<vmem>>, vector<1x1x8x8xbf16>,
    %68 = vector.extract_strided_slice %55 {offsets = [0, 24], sizes = [8, 8], strides = [1, 1]} : vector<8x32xbf16> to vector<8x8xbf16>
    %c0_63 = arith.constant 0 : index
    %c3_64 = arith.constant 3 : index
    %c0_65 = arith.constant 0 : index
    %c0_66 = arith.constant 0 : index
    %69 = vector.load %arg13[%c0_63, %c3_64, %c0_65, %c0_66] : memref<1x4x8x8xbf16, #tpu.memory_space<vmem>>, vector<1x1x8x8xbf16>
    %70 = vector.shape_cast %69 : vector<1x1x8x8xbf16> to vector<8x8xbf16>
    %71 = vector.shape_cast %68 : vector<8x8xbf16> to vector<1x1x8x8xbf16>
    tpu.vector_store %arg13[%c0_63, %c3_64, %c0_65, %c0_66], %71 {strides = array<i32>} : memref<1x4x8x8xbf16, #tpu.memory_space<vmem>>, vector<1x1x8x8xbf16>,
    return
  }
  func.func @transform_0(%arg0: i32, %arg1: i32) -> (i32, i32, i32) {
    %c0_i32 = arith.constant 0 : i32
    %c0_i32_0 = arith.constant 0 : i32
    return %arg0, %arg1, %c0_i32 : i32, i32, i32
  }
  func.func @transform_1(%arg0: i32, %arg1: i32) -> (i32, i32, i32) {
    %c0_i32 = arith.constant 0 : i32
    %c0_i32_0 = arith.constant 0 : i32
    return %arg0, %arg1, %c0_i32 : i32, i32, i32
  }
  func.func @transform_2(%arg0: i32, %arg1: i32) -> (i32, i32, i32) {
    %c0_i32 = arith.constant 0 : i32
    %c0_i32_0 = arith.constant 0 : i32
    return %arg0, %arg1, %c0_i32 : i32, i32, i32
  }
  func.func @transform_3(%arg0: i32, %arg1: i32) -> (i32, i32) {
    %c0_i32 = arith.constant 0 : i32
    %c0_i32_0 = arith.constant 0 : i32
    %c0_i32_1 = arith.constant 0 : i32
    return %c0_i32, %c0_i32_0 : i32, i32
  }
  func.func @transform_4(%arg0: i32, %arg1: i32) -> (i32, i32) {
    %c0_i32 = arith.constant 0 : i32
    %c0_i32_0 = arith.constant 0 : i32
    %c0_i32_1 = arith.constant 0 : i32
    return %c0_i32, %c0_i32_0 : i32, i32
  }
  func.func @transform_5(%arg0: i32, %arg1: i32) -> (i32, i32) {
    %c0_i32 = arith.constant 0 : i32
    %c0_i32_0 = arith.constant 0 : i32
    %c0_i32_1 = arith.constant 0 : i32
    return %c0_i32, %c0_i32_0 : i32, i32
  }
  func.func @transform_6(%arg0: i32, %arg1: i32) -> (i32, i32) {
    %c0_i32 = arith.constant 0 : i32
    %c0_i32_0 = arith.constant 0 : i32
    %c0_i32_1 = arith.constant 0 : i32
    return %c0_i32, %c0_i32_0 : i32, i32
  }
  func.func @transform_7(%arg0: i32, %arg1: i32) -> (i32, i32) {
    %c0_i32 = arith.constant 0 : i32
    %c0_i32_0 = arith.constant 0 : i32
    %c0_i32_1 = arith.constant 0 : i32
    return %c0_i32, %c0_i32_0 : i32, i32
  }
  func.func @transform_8(%arg0: i32, %arg1: i32) -> (i32, i32) {
    %c0_i32 = arith.constant 0 : i32
    %c0_i32_0 = arith.constant 0 : i32
    %c0_i32_1 = arith.constant 0 : i32
    return %c0_i32, %c0_i32_0 : i32, i32
  }
  func.func @transform_9(%arg0: i32, %arg1: i32) -> (i32, i32, i32, i32) {
    %c0_i32 = arith.constant 0 : i32
    %c0_i32_0 = arith.constant 0 : i32
    %c0_i32_1 = arith.constant 0 : i32
    return %arg0, %c0_i32, %arg1, %c0_i32_0 : i32, i32, i32, i32
  }
  func.func @transform_10(%arg0: i32, %arg1: i32) -> (i32, i32, i32, i32) {
    %c0_i32 = arith.constant 0 : i32
    %c0_i32_0 = arith.constant 0 : i32
    %c0_i32_1 = arith.constant 0 : i32
    return %arg0, %c0_i32, %arg1, %c0_i32_0 : i32, i32, i32, i32
  }
  func.func @transform_11(%arg0: i32, %arg1: i32) -> (i32, i32, i32, i32) {
    %c0_i32 = arith.constant 0 : i32
    %c0_i32_0 = arith.constant 0 : i32
    %c0_i32_1 = arith.constant 0 : i32
    return %arg0, %c0_i32, %arg1, %c0_i32_0 : i32, i32, i32, i32
  }
}

</mosaic_0001>

<bundles_post_ra>
// kernel: tpu_custom_call.1
= control target key start
LH: loop header
LB: loop body
LE: loop exit
PB: predicated region body
PF: predicated region fallthrough
CT: control target
= control target key end

     0   :  { %s1968_s0 = inlined_call_operand.hbm [shape: bf16[2,8,32], index: 0, kind: input, shape index: {}]   ;;  %s1969_s1 = inlined_call_operand.hbm [shape: bf16[2,8,32], index: 1, kind: input, shape index: {}]   ;;  %s1970_s2 = inlined_call_operand.hbm [shape: bf16[2,8,32], index: 2, kind: input, shape index: {}]   ;;  %s1971_s3 = inlined_call_operand.hbm [shape: bf16[32,32], index: 3, kind: input, shape index: {}]   ;;  %s1972_s4 = inlined_call_operand.vmem [shape: f32[1,32], index: 4, kind: input, shape index: {}]   ;;  %s1973_s5 = inlined_call_operand.hbm [shape: bf16[32,32], index: 5, kind: input, shape index: {}]   ;;  %s1974_s6 = inlined_call_operand.vmem [shape: f32[1,32], index: 6, kind: input, shape index: {}]   ;;  %s1975_s7 = inlined_call_operand.hbm [shape: bf16[32,32], index: 7, kind: input, shape index: {}]   ;;  %s1976_s8 = inlined_call_operand.vmem [shape: f32[1,32], index: 8, kind: input, shape index: {}]   ;;  %s1977_s9 = inlined_call_operand.hbm [shape: bf16[2,4,8,8], index: 9, kind: output, shape index: {0}]   ;;  %s1978_s10 = inlined_call_operand.hbm [shape: bf16[2,4,8,8], index: 10, kind: output, shape index: {1}]   ;;  %s1979_s11 = inlined_call_operand.hbm [shape: bf16[2,4,8,8], index: 11, kind: output, shape index: {2}]  }
   0x1   :  { %1997 = sst [smem:[#allocation31_spill]] %s1969_s1 }
   0x2   :  { %1998 = sst [smem:[#allocation32_spill]] %s1971_s3 }
   0x3   :  { %1999 = sst [smem:[#allocation33_spill]] %s1973_s5 }
   0x4   :  { %2000 = sst [smem:[#allocation34_spill]] %s1975_s7 }
   0x5   :  { %2001 = sst [smem:[#allocation35_spill]] %s1977_s9 }
   0x6   :  { %2002 = sst [smem:[#allocation36_spill]] %s1978_s10 }
   0x7   :  { %2003 = sst [smem:[#allocation37_spill]] %s1979_s11 }
   0x8   :  { %17 = vsyncpa [#allocation3], 0 }
   0x9   :  { %19 = vsyncpa [#allocation3 + $0x1], 0 }
   0xa   :  { %20 = vsyncpa [#allocation6], 0 }
   0xb   :  { %22 = vsyncpa [#allocation6 + $0x1], 0 }
   0xc   :  { %23 = vsyncpa [#allocation9], 0 }
   0xd   :  { %24 = vsyncpa [#allocation12], 0 }
   0xe   :  { %25 = vsyncpa [#allocation4], 0 }
   0xf   :  { %27 = vsyncpa [#allocation4 + $0x1], 0 }
  0x10   :  { %28 = vsyncpa [#allocation15], 0 }
  0x11   :  { %30 = vsyncpa [#allocation15 + $0x1], 0  ;;  %s1638_s17 = smov 0   ;;  %s1640_s18 = smov 0  }
  0x12   :  { %s1642_s19 = smov 0   ;;  %s1644_s20 = smov 0  }
  0x13   :  { %s1646_s21 = smov 0   ;;  %s1648_s22 = smov 0  }
  0x14 LB: > { %2004 = sst [smem:[#allocation23_spill]] %s1546_s17  ;;  %s1669_s23 = sadd.s32 4294967295, %s1566_s22   ;;  %s1566_s22 = sphi %s1648_s22, %s36_s22   ;;  %s1562_s21 = sphi %s1646_s21, %s2037_s21   ;;  %s1558_s20 = sphi %s1644_s20, %s2036_s20   ;;  %s1554_s19 = sphi %s1642_s19, %s2040_s19   ;;  %s1550_s18 = sphi %s1640_s18, %s2039_s18   ;;  %s1546_s17 = sphi %s1638_s17, %s2038_s17  }
  0x15   : > { %2005 = sst [smem:[#allocation24_spill]] %s1558_s20  ;;  %p1032_p0 = scmp.ge.s32.totalorder %s1566_s22, 1 }
  0x16   : > { %2006 = sst [smem:[#allocation25_spill]] %s1562_s21  ;;  %p71_p1 = scmp.eq.s32.totalorder %s1669_s23, 0 }
  0x17   : > { %2007 = sst [smem:[#allocation26_spill]] %s1566_s22  ;;  %p347_p2 = scmp.lt.s32.totalorder %s1566_s22, 3 }
  0x18   : > { %s2008_s3 = sld [smem:[#allocation32_spill]]  ;;  %s1568_s28 = smov [#allocation8]  }
  0x19   : > { %p1677_p3 = pnand %p1032_p0, %p347_p2  ;;  %s360_s29 = sshll.u32 %s1568_s28, 4  ;;  %s361_s29 = int_to_ptr.vmem [resolvable:$true] %s360_s29 }
  0x1a   : > { %p1036_p6 = scmp.ge.s32.totalorder %s1566_s22, 2  ;;  %s1980_s12 = smov 64  }
  0x1b   : > { %p1133_p4 = pneg %p1677_p3  ;;  %s1982_s13 = smov 4  }
  0x1c   : > { %s1985_s14 = sadd.s32 4294967294, %s1566_s22   ;;  %s48_s15 = sadd.s32 1, %s1562_s21 }
  0x1d   : > { %p1685_p5 = pnand %p1133_p4, %p71_p1  ;;  %s57_s16 = sadd.s32 1, %s1554_s19 }
  0x1e   : > { %s358_s26 = sshll.u32 %s2008_s3, 4  ;;  %p50_p7 = scmp.ge.s32.totalorder %s48_s15, 2  ;;  %s359_s26 = int_to_ptr.hbm [resolvable:$true] %s358_s26 }
  0x1f   : > { %1136 = dma.hbm_to_vmem [thread:$0]  (!%p1685_p5), %s359_s26, 256, %s361_s29, [#allocation9], %s1980_s12, %s1980_s12, %s1982_s13  }
  0x20   : > { %p64_p8 = scmp.ne.s32.totalorder %s1554_s19, %s1550_s18  ;;  %p65_p9 = scmp.eq.s32.totalorder %s1566_s22, 0 }
  0x21   : > { %p70_p10 = scmp.ne.s32.totalorder %s1550_s18, %s1546_s17  ;;  %s2042_s15 = smov (%p50_p7, %s48_s15), 0 }
  0x22   : > { %2011 = sst [smem:[#allocation27_spill]] %s2042_s15  ;;  %p1705_p11 = por %p65_p9, %p64_p8 }
  0x23   : > { %p1711_p12 = por %p71_p1, %p70_p10  ;;  %s52_s26 = ssub.s32 %s1562_s21, %s2042_s15 }
  0x24   : > { %p278_p13 = scmp.eq.s32.totalorder %s1669_s23, 1  ;;  %p55_p0 = scmp.eq.s32.totalorder %s52_s26, 0 }
  0x25   : > { %p284_p2 = scmp.eq.s32.totalorder %s1985_s14, 1  ;;  %p1166_p7 = scmp.lt.s32.totalorder %s1566_s22, 2 }
  0x26   : > { %p1720_p4 = por %p278_p13, %p64_p8  ;;  %s1989_s13 = sand.u32 1, %s1554_s19  }
  0x27   : > { %s1726_s29 = scalar_select %p55_p0, %s1554_s19, %s57_s16  }
  0x28   : > { %s2014_s28 = scalar_select %p1720_p4, 1, 0 }
  0x29   : > { %2016 = sst [smem:[#allocation29_spill]] %s1726_s29  ;;  %p1728_p9 = por %p284_p2, %p70_p10 }
  0x2a   : > { %2015 = sst [smem:[#allocation28_spill]] %s2014_s28  ;;  %s1735_s3 = sshll.u32 %s1989_s13, 2 }
  0x2b   : > { %s2017_s12 = scalar_select %p1728_p9, 1, 0 }
  0x2c   : > { %s1738_s15 = sshll.u32 %s1562_s21, 2  ;;  %p1742_p8 = pnand %p1166_p7, %p1705_p11 }
  0x2d   : > { %2018 = sst [smem:[#allocation30_spill]] %s2017_s12  ;;  %s431_s16 = sand.u32 1, %s1566_s22  }
  0x2e   : > { %s2020_s1 = sld [smem:[#allocation31_spill]]  ;;  %s435_s11 = scalar_lea.vmem [#allocation5], %s1735_s3 }
  0x2f   : > { %s444_s13 = sshll.u32 %s435_s11, 4  ;;  %s1752_s24 = scalar_lea.sflag [#allocation6], %s431_s16  ;;  %s445_s13 = int_to_ptr.vmem [resolvable:$true] %s444_s13 }
  0x30   : > { %s2021_s5 = sld [smem:[#allocation33_spill]]  ;;  %s1571_s14 = smov [#allocation10]  }
  0x31   : > { %s2022_s7 = sld [smem:[#allocation34_spill]]  ;;  %s2023_s16 = smov 4  }
  0x32   : > { %s2024_s9 = smov 64   ;;  %s415_s11 = scalar_lea.vmem [#allocation2], %s1735_s3 }
  0x33   : > { %s424_s29 = sshll.u32 %s415_s11, 4  ;;  %s455_s10 = scalar_lea.vmem [#allocation7], %s1735_s3  ;;  %s425_s29 = int_to_ptr.vmem [resolvable:$true] %s424_s29 }
  0x34   : > { %s440_s12 = scalar_lea.hbm %s2020_s1, %s1738_s15  ;;  %s464_s20 = sshll.u32 %s455_s10, 4  ;;  %s465_s20 = int_to_ptr.vmem [resolvable:$true] %s464_s20 }
  0x35   : > { %s442_s17 = sshll.u32 %s440_s12, 4  ;;  %s377_s12 = sshll.u32 %s1571_s14, 4  ;;  %s443_s17 = int_to_ptr.hbm [resolvable:$true] %s442_s17  ;;  %s378_s12 = int_to_ptr.vmem [resolvable:$true] %s377_s12 }
  0x36   : > { %1149 = dma.hbm_to_vmem [thread:$0]  (!%p1742_p8), %s443_s17, 64, %s445_s13, %s1752_s24  }
  0x37   : > { %s375_s22 = sshll.u32 %s2021_s5, 4  ;;  %s392_s1 = sshll.u32 %s2022_s7, 4  ;;  %s376_s22 = int_to_ptr.hbm [resolvable:$true] %s375_s22  ;;  %s393_s1 = int_to_ptr.hbm [resolvable:$true] %s392_s1 }
  0x38   : > { %1139 = dma.hbm_to_vmem [thread:$0]  (!%p1685_p5), %s376_s22, 256, %s378_s12, [#allocation9], %s2024_s9, %s2024_s9, %s2023_s16  }
  0x39   : > { %s1572_s17 = smov [#allocation11]   ;;  %s420_s14 = scalar_lea.hbm %s1968_s0, %s1738_s15 }
  0x3a   : > { %s394_s21 = sshll.u32 %s1572_s17, 4  ;;  %s422_s5 = sshll.u32 %s420_s14, 4  ;;  %s395_s21 = int_to_ptr.vmem [resolvable:$true] %s394_s21  ;;  %s423_s5 = int_to_ptr.hbm [resolvable:$true] %s422_s5 }
  0x3b   : > { %1142 = dma.hbm_to_vmem [thread:$0]  (!%p1685_p5), %s393_s1, 256, %s395_s21, [#allocation12], %s2024_s9, %s2024_s9, %s2023_s16  }
  0x3c   : > { %s2025_s22 = sand.u32 1, %s1554_s19   ;;  %s460_s7 = scalar_lea.hbm %s1970_s2, %s1738_s15 }
  0x3d   : > { %s412_s12 = scalar_lea.sflag [#allocation3], %s2025_s22  ;;  %s462_s1 = sshll.u32 %s460_s7, 4  ;;  %s463_s1 = int_to_ptr.hbm [resolvable:$true] %s462_s1 }
  0x3e   : > { %1146 = dma.hbm_to_vmem [thread:$0]  (!%p1742_p8), %s423_s5, 64, %s425_s29, %s412_s12  }
  0x3f   : > { %1152 = dma.hbm_to_vmem [thread:$0]  (!%p1742_p8), %s463_s1, 64, %s465_s20, %s1752_s24  }
  0x40   : > { %473 = sbr.rel (%p1677_p3) target bundleno = 373 (0x175), region = 56  ;;  %s1793_s9 = sand.u32 (!%p1677_p3), 1, %s1550_s18  }
  0x41   : > { %s1796_s5 = sshll.u32 (!%p1677_p3), %s1793_s9, 2  ;;  %s476_s15 = scalar_lea.sflag (!%p1677_p3), [#allocation3], %s1793_s9 }
  0x42   : > { %s479_s3 = scalar_lea.vmem (!%p1677_p3), [#allocation2], %s1796_s5 }
  0x45   : > { %1521 = dma.done.wait (%p1711_p12), %s476_s15, 64  }
  0x46   : > { %1523 = vsyncadd (%p1711_p12), %s476_s15, 4294967232  ;;  %s485_s7 = sand.u32 1, %s1669_s23   ;;  %s489_s20 = scalar_lea.vmem [#allocation5], %s1796_s5 }
  0x47   : > { %s486_s10 = scalar_lea.sflag [#allocation6], %s485_s7 }
  0x48   : > { %1525 = dma.done.wait (%p1711_p12), %s486_s10, 128  }
  0x49   : > { %1527 = vsyncadd (%p1711_p12), %s486_s10, 4294967168  ;;  %s499_s27 = scalar_lea.vmem [#allocation7], %s1796_s5 }
  0x4a   : > { %1529 = dma.done.wait (%p71_p1), [#allocation9], 512  }
  0x4b   : > { %1531 = vsyncadd (%p71_p1), [#allocation9], 4294966784 }
  0x4c   : > { %1533 = dma.done.wait (%p71_p1), [#allocation12], 256  }
  0x4d   : > { %1535 = vsyncadd (%p71_p1), [#allocation12], 4294967040  ;;  %v1101_v0 = vld [vmem:[#allocation8 + $0x8] sm:$0xff]  ;;  %v1103_v1 = vld [vmem:[#allocation10 + $0x8] sm:$0xff]  ;;  %vm596_vm0 = vcmask 261120   ;;  %s1050_s21 = sshll.u32 %s1793_s9, 4 }
  0x4e   : > { %v1105_v2 = vld [vmem:[#allocation11 + $0x8] sm:$0xff]  ;;  %606 = vmatpush.bf16.msra.mxu0 %v1101_v0  ;;  %662 = vmatpush.bf16.msra.mxu1 %v1103_v1  ;;  %v1100_v3 = vld [vmem:[#allocation8] sm:$0xff]  ;;  %v1102_v4 = vld [vmem:[#allocation10] sm:$0xff]  ;;  %vm614_vm1 = vcmask 60416   ;;  %s1831_s14 = scalar_lea.vmem [#allocation13], %s1050_s21  ;;  %s1573_s11 = smov 104  }
  0x4f   : > { %717 = vmatpush.bf16.msra.mxu2 %v1105_v2  ;;  %v1104_v5 = vld [vmem:[#allocation11] sm:$0xff]  ;;  %v575_v6 = vld [vmem:[%s479_s3] sm:$0xf]  ;;  %v632_v7 = vld [vmem:[%s489_s20] sm:$0xf]  ;;  %s1574_s29 = smov 120  }
  0x50   : > { %v687_v8 = vld [vmem:[%s499_s27] sm:$0xf]  ;;  %v1229_v9 = vld [vmem:[%s1972_s4] ss:$0 sm:$0xff]  ;;  %s1835_s22 = scalar_lea.vmem [#allocation14], %s1050_s21  ;;  %s1575_s12 = smov 112  }
  0x51   : > { %v1230_v10 = vld [vmem:[%s1974_s6] ss:$0 sm:$0xff]  ;;  %s2026_s30 = sld [smem:[#allocation24_spill]]  ;;  %s1839_s17 = scalar_lea.vmem [#allocation16], %s1050_s21 }
  0x52   : > { %607 = vmatpush.bf16.msra.mxu0 %v1100_v3  ;;  %663 = vmatpush.bf16.msra.mxu1 %v1102_v4  ;;  %v1231_v17 = vld [vmem:[%s1976_s8] ss:$0 sm:$0xff]  ;;  %s766_s5 = sshll.u32 %s1831_s14, 4  ;;  %s2027_s10 = sld [smem:[#allocation36_spill]]  ;;  %s1866_s5 = int_to_ptr.vmem [resolvable:$true] %s766_s5 }
  0x53   : > { %718 = vmatpush.bf16.msra.mxu2 %v1104_v5  ;;  %s784_s27 = sshll.u32 %s1835_s22, 4  ;;  %s2028_s24 = sld [smem:[#allocation35_spill]]  ;;  %s785_s27 = int_to_ptr.vmem [resolvable:$true] %s784_s27 }
  0x54   : > { %s1884_s15 = scalar_lea.sflag [#allocation15], %s485_s7 }
  0x55   : > { %1061 = vmatmul.msk.bf16.vlgmr.msra.gmra.mxu0 %vm596_vm0, %v575_v6  ;;  %1073 = vmatmul.msk.bf16.vlgmr.msra.gmra.mxu1 %vm596_vm0, %v632_v7 }
  0x56   : > { %1085 = vmatmul.msk.bf16.vlgmr.msra.gmra.mxu2 %vm596_vm0, %v687_v8 }
  0x57   : > { %s1850_s1 = sshll.u32 %s2026_s30, 4 }
  0x58   : > { %s783_s20 = scalar_lea.hbm %s2027_s10, %s1850_s1 }
  0x59   : > { %s765_s16 = scalar_lea.hbm %s2028_s24, %s1850_s1  ;;  %s1868_s13 = sshll.u32 %s783_s20, 4  ;;  %s787_s13 = int_to_ptr.hbm [resolvable:$true] %s1868_s13 }
  0x5a   : > { %s1870_s28 = sshll.u32 %s765_s16, 4  ;;  %s1426_s3 = sshra.s32 %s787_s13, 4  ;;  %s769_s28 = int_to_ptr.hbm [resolvable:$true] %s1870_s28  ;;  %s1427_s3 = int_to_ptr.hbm [resolvable:$true] %s1426_s3 }
  0x5b   : > { %s1428_s20 = scalar_lea.hbm %s1427_s3, 16  ;;  %p1433_p10 = scmp.lt.s32.totalorder %s1427_s3, %s2027_s10 }
  0x5c   : > { %p1429_p1 = scmp.ne.s32.totalorder %s1427_s3, %s1428_s20 }
  0x5e   : > { %p1430_p3 = pnand %p1429_p1, %p1720_p4 }
  0x60   : > { %p1431_p5 = pneg %p1430_p3 }
  0xd2   : > { %v609_v11 = vpop.f32.mrf.mxu0  ;;  %v665_v12 = vpop.f32.mrf.mxu1 }
  0xd3   : > { %v610_v13 = vadd.f32 %v1229_v9, %v609_v11  ;;  %v666_v14 = vadd.f32 %v1230_v10, %v665_v12 }
  0xd5   : > { %v613_v15 = vpack.c.bf16 %v610_v13, %v610_v13  ;;  %v669_v16 = vpack.c.bf16 %v666_v14, %v666_v14 }
  0xd7   : > { %615 = vst.msk [vmem:[%s1831_s14] sm:$0xf] %vm614_vm1, %v613_v15  ;;  %682 = vrot.lane.b32.xlu1 %v669_v16, %s1573_s11  ;;  %672 = vrot.lane.b32.xlu0 %v669_v16, %s1574_s29 }
  0xd8   : > { %670 = vst.msk [vmem:[%s1835_s22] sm:$0xf] %vm614_vm1, %v669_v16  ;;  %622 = vrot.lane.b32.xlu2 %v613_v15, %s1575_s12 }
  0xd9   : > { %v720_v18 = vpop.f32.mrf.mxu2 }
  0xda   : > { %v611_v19 = vpop.f32.mrf.mxu0  ;;  %v667_v20 = vpop.f32.mrf.mxu1  ;;  %v721_v21 = vadd.f32 %v1231_v17, %v720_v18 }
  0xdc   : > { %v724_v22 = vpack.c.bf16 %v721_v21, %v721_v21 }
  0xde   : > { %725 = vst.msk [vmem:[%s1839_s17] sm:$0xf] %vm614_vm1, %v724_v22 }
  0xdf   : > { %677 = vrot.lane.b32.xlu0 %v669_v16, %s1575_s12  ;;  %617 = vrot.lane.b32.xlu1 %v613_v15, %s1574_s29 }
  0xe0   : > { %627 = vrot.lane.b32.xlu2 %v613_v15, %s1573_s11 }
  0xe1   : > { %v722_v23 = vpop.f32.mrf.mxu2 }
  0xe7   : > { %727 = vrot.lane.b32.xlu0 %v724_v22, %s1574_s29  ;;  %732 = vrot.lane.b32.xlu1 %v724_v22, %s1575_s12  ;;  %s2030_s12 = sld [smem:[#allocation37_spill]] }
  0xe8   : > { %737 = vrot.lane.b32.xlu2 %v724_v22, %s1573_s11 }
  0xed   : > { %s801_s30 = scalar_lea.hbm %s2030_s12, %s1850_s1 }
 0x132   : > { %v623_v24 = vpop.permute.xlu2 %622 }
 0x133   : > { %1063 = vst.msk [vmem:[%s1831_s14 + $0x8] sm:$0xf] %vm614_vm1, %v623_v24 }
 0x13a   : > { %v628_v25 = vpop.permute.xlu2 %627 }
 0x13b   : > { %1064 = vst.msk [vmem:[%s1831_s14 + $0xc] sm:$0xf] %vm614_vm1, %v628_v25 }
 0x142   : > { %v738_v26 = vpop.permute.xlu2 %737 }
 0x143   : > { %1088 = vst.msk [vmem:[%s1839_s17 + $0xc] sm:$0xf] %vm614_vm1, %v738_v26 }
 0x149   : > { %v683_v27 = vpop.permute.xlu1 %682  ;;  %v673_v28 = vpop.permute.xlu0 %672 }
 0x14a   : > { %1076 = vst.msk [vmem:[%s1835_s22 + $0xc] sm:$0xf] %vm614_vm1, %v683_v27 }
 0x14b   : > { %1074 = vst.msk [vmem:[%s1835_s22 + $0x4] sm:$0xf] %vm614_vm1, %v673_v28 }
 0x151   : > { %v678_v29 = vpop.permute.xlu0 %677  ;;  %v618_v30 = vpop.permute.xlu1 %617 }
 0x152   : > { %1075 = vst.msk [vmem:[%s1835_s22 + $0x8] sm:$0xf] %vm614_vm1, %v678_v29  ;;  %s1432_s22 = scalar_lea.hbm %s2027_s10, 32 }
 0x153   : > { %1062 = vst.msk [vmem:[%s1831_s14 + $0x4] sm:$0xf] %vm614_vm1, %v618_v30  ;;  %p1434_p11 = scmp.lt.s32.totalorder %s1432_s22, %s1428_s20 }
 0x155   : > { %p1435_p12 = por %p1434_p11, %p1433_p10 }
 0x157   : > { %p1436_p13 = pnand %p1435_p12, %p1431_p5 }
 0x159   : > { %1439 = shalt.err (!%p1436_p13)
}
 0x15a   : > { %s1576_s23 = smov 64   ;;  %s1577_s7 = smov 4  }
 0x15b   : > { %1128 = dma.vmem_to_hbm [thread:$0]  (%p1720_p4), %s785_s27, 256, %s787_s13, %s1884_s15, %s1576_s23, %s1576_s23, %s1577_s7  }
 0x15c   : > { %s743_s11 = scalar_lea.sflag [#allocation4], %s1793_s9  ;;  %s1454_s29 = sshra.s32 %s769_s28, 4  ;;  %s1455_s29 = int_to_ptr.hbm [resolvable:$true] %s1454_s29 }
 0x15d   : > { %s1456_s3 = scalar_lea.hbm %s1455_s29, 16  ;;  %s1460_s26 = scalar_lea.hbm %s2028_s24, 32 }
 0x15e   : > { %p1457_p0 = scmp.ne.s32.totalorder %s1455_s29, %s1456_s3  ;;  %p1461_p8 = scmp.lt.s32.totalorder %s1455_s29, %s2028_s24 }
 0x15f   : > { %p1462_p1 = scmp.lt.s32.totalorder %s1460_s26, %s1456_s3 }
 0x160   : > { %p1458_p2 = pnand %p1457_p0, %p1720_p4 }
 0x161   : > { %p1463_p3 = por %p1462_p1, %p1461_p8 }
 0x162   : > { %p1459_p7 = pneg %p1458_p2 }
 0x164   : > { %p1464_p5 = pnand %p1463_p3, %p1459_p7 }
 0x166   : > { %1467 = shalt.err (!%p1464_p5)
}
 0x167   : > { %1127 = dma.vmem_to_hbm [thread:$0]  (%p1720_p4), %s1866_s5, 256, %s769_s28, %s743_s11, %s1576_s23, %s1576_s23, %s1577_s7   ;;  %v728_v31 = vpop.permute.xlu0 %727  ;;  %v733_v32 = vpop.permute.xlu1 %732 }
 0x168   : > { %s802_s9 = sshll.u32 %s1839_s17, 4  ;;  %s804_s14 = sshll.u32 %s801_s30, 4  ;;  %1086 = vst.msk [vmem:[%s1839_s17 + $0x4] sm:$0xf] %vm614_vm1, %v728_v31  ;;  %s803_s9 = int_to_ptr.vmem [resolvable:$true] %s802_s9  ;;  %s805_s14 = int_to_ptr.hbm [resolvable:$true] %s804_s14 }
 0x169   : > { %1087 = vst.msk [vmem:[%s1839_s17 + $0x8] sm:$0xf] %vm614_vm1, %v733_v32  ;;  %s1482_s29 = sshra.s32 %s805_s14, 4  ;;  %s1488_s1 = scalar_lea.hbm %s2030_s12, 32  ;;  %s1483_s29 = int_to_ptr.hbm [resolvable:$true] %s1482_s29 }
 0x16a   : > { %s1484_s3 = scalar_lea.hbm %s1483_s29, 16  ;;  %p1489_p13 = scmp.lt.s32.totalorder %s1483_s29, %s2030_s12 }
 0x16b   : > { %p1485_p10 = scmp.ne.s32.totalorder %s1483_s29, %s1484_s3  ;;  %p1490_p0 = scmp.lt.s32.totalorder %s1488_s1, %s1484_s3 }
 0x16d   : > { %p1486_p11 = pnand %p1485_p10, %p1720_p4  ;;  %p1491_p2 = por %p1490_p0, %p1489_p13 }
 0x16f   : > { %p1487_p12 = pneg %p1486_p11 }
 0x171   : > { %p1492_p7 = pnand %p1491_p2, %p1487_p12 }
 0x173   : > { %1495 = shalt.err (!%p1492_p7)
}
 0x174   : > { %1129 = dma.vmem_to_hbm [thread:$0]  (%p1720_p4), %s803_s9, 256, %s805_s14, %s1884_s15, %s1576_s23, %s1576_s23, %s1577_s7  }
 0x175 PF: > { %s2031_s17 = sld [smem:[#allocation23_spill]]  ;;  %p1154_p8 = pnand %p1036_p6, %p1728_p9 }
 0x176   : > { %s2033_s25 = sld [smem:[#allocation26_spill]] }
 0x177   : > { %p1155_p1 = pneg %p1154_p8 }
 0x17b   : > { %s819_s26 = sand.u32 1, %s2031_s17  }
 0x17c   : > { %s820_s22 = scalar_lea.sflag [#allocation4], %s819_s26 }
 0x17d   : > { %1537 = dma.done.wait (%p1155_p1), %s820_s22, 256  }
 0x17e   : > { %1539 = vsyncadd (%p1155_p1), %s820_s22, 4294967040  ;;  %s2034_s16 = sadd.s32 4294967294, %s2033_s25  }
 0x17f   : > { %s829_s21 = sand.u32 1, %s2034_s16  }
 0x180   : > { %s830_s27 = scalar_lea.sflag [#allocation15], %s829_s21 }
 0x181   : > { %1541 = dma.done.wait (%p1155_p1), %s830_s27, 512  }
 0x182   : > { %1543 = vsyncadd (%p1155_p1), %s830_s27, 4294966784  ;;  %s36_s22 = sadd.s32 1, %s2033_s25   ;;  %s2035_s15 = sld [smem:[#allocation29_spill]] }
 0x183   : > { %p33_p4 = scmp.ge.s32.totalorder %s36_s22, 4   ;;  %s2036_s20 = sld [smem:[#allocation25_spill]] }
 0x184   : > { %s2037_s21 = sld [smem:[#allocation27_spill]]  ;;  %s2038_s17 = smov %s1550_s18 }
 0x185   : > { %s2039_s18 = smov %s1554_s19  ;;  %35 = sbr.rel (!%p33_p4) target bundleno = 20 (0x14), region = 178 }
 0x188   : > { %s2040_s19 = smov %s2035_s15 }
 0x18a   :  { %846 = vsyncpa [#allocation3], 1 }
 0x18b   :  { %848 = vsyncpa [#allocation3 + $0x1], 1 }
 0x18c   :  { %849 = vsyncpa [#allocation6], 1 }
 0x18d   :  { %851 = vsyncpa [#allocation6 + $0x1], 1 }
 0x18e   :  { %852 = vsyncpa [#allocation9], 1 }
 0x18f   :  { %853 = vsyncpa [#allocation12], 1 }
 0x190   :  { %854 = vsyncpa [#allocation4], 1 }
 0x191   :  { %856 = vsyncpa [#allocation4 + $0x1], 1 }
 0x192   :  { %857 = vsyncpa [#allocation15], 1 }
 0x193   :  { %859 = vsyncpa [#allocation15 + $0x1], 1 }

</bundles_post_ra>
